<compile_context>
chip_gen: v7x
topology: tpu7x:2x2x1
jax: 0.10.0
libtpu: 0.0.40
codegen_flags: <defaults>
</compile_context>

<pallas_src>
import math

import jax
import jax.numpy as jnp
from jax.experimental import pallas as pl
from jax.experimental.pallas import tpu as pltpu


# ----------------------------------------------------------------------------
# Haar (db1) combined operators — plain JAX, built once
# ----------------------------------------------------------------------------
def haar_operators(in_size: int, level: int):
    """Combined Haar operators for pywt.wavedec2(x, 'db1')[level] (level >= 1).

    Returns RA (low-pass to depth L) and RH (low-pass to depth L-1 then one
    high-pass step), both of shape (in_size / 2**L, in_size), where
    L = log2(in_size) - level + 1 (pywt wavedec2 list-index convention).
    """
    max_level = int(math.log2(in_size))
    L = max_level - level + 1
    assert 1 <= L <= max_level
    inv_sqrt2 = 1.0 / math.sqrt(2.0)

    def lo(s):
        m = jnp.zeros((s // 2, s), jnp.float32)
        idx = jnp.arange(s // 2)
        m = m.at[idx, 2 * idx].set(inv_sqrt2)
        m = m.at[idx, 2 * idx + 1].set(inv_sqrt2)
        return m

    def hi(s):
        m = jnp.zeros((s // 2, s), jnp.float32)
        idx = jnp.arange(s // 2)
        m = m.at[idx, 2 * idx].set(inv_sqrt2)
        m = m.at[idx, 2 * idx + 1].set(-inv_sqrt2)
        return m

    P = jnp.eye(in_size, dtype=jnp.float32)
    s = in_size
    for _ in range(L - 1):
        P = lo(s) @ P
        s //= 2
    RA = lo(s) @ P
    RH = hi(s) @ P
    return RA, RH


def build_combined_operator(ra, rh, w_flat, b):
    """Fold wavelet + 3 Linear heads into one (S*S, 3*H) operator + bias.

    w_flat : (3, SL*SL, H)  (torch weight transposed, row-major flatten order)
    b      : (3, H)
    Columns are channel-interleaved (col = h*3 + c) so the final (N, H, 3)
    layout is a free contiguous reshape.  Returns M_pad (S*S, K_pad) and
    bias_pad (1, K_pad) with K_pad = ceil(3H/128)*128 (lane-dense stores).
    """
    sl, s = ra.shape
    hidden = w_flat.shape[-1]
    # channel order matches pywt detail tuple:
    #   cH ('da') = RH @ x @ RA.T, cV ('ad') = RA @ x @ RH.T, cD ('dd') = RH @ x @ RH.T
    ops = ((rh, ra), (ra, rh), (rh, rh))
    cols = []
    for c, (r_row, r_col) in enumerate(ops):
        wc = w_flat[c].reshape(sl, sl, hidden)
        # M_c[i*s + j, h] = sum_{p,q} r_row[p,i] * r_col[q,j] * wc[p,q,h]
        mc = jnp.einsum("pi,qj,pqh->ijh", r_row, r_col, wc).reshape(s * s, hidden)
        cols.append(mc)
    M = jnp.stack(cols, axis=-1).reshape(s * s, 3 * hidden)      # interleaved
    bias = jnp.transpose(b).reshape(1, 3 * hidden)               # bias[h*3 + c]

    k = 3 * hidden
    k_pad = ((k + 127) // 128) * 128                             # lane-dense width
    if k_pad != k:
        M = jnp.pad(M, ((0, 0), (0, k_pad - k)))
        bias = jnp.pad(bias, ((0, 0), (0, k_pad - k)))
    return M, bias


# ----------------------------------------------------------------------------
# Pallas kernel: one batched GEMM per grid step
# ----------------------------------------------------------------------------
def microwav_kernel(x_ref, m_ref, b_ref, o_ref):
    # x_ref: (Bt, S*S)   m_ref: (S*S, K_pad)   b_ref: (1, K_pad)   o_ref: (Bt, K_pad)
    x = x_ref[...].astype(m_ref.dtype)            # in-kernel cast (no HBM pass)
    acc = jnp.dot(x, m_ref[...], preferred_element_type=jnp.float32)
    o_ref[...] = (acc + b_ref[...]).astype(o_ref.dtype)


def microwav_forward(x, M_pad, bias_pad, hidden, *, block_batch=2048,
                     compute_dtype=jnp.float32, out_dtype=jnp.float32):
    """x: (N, S, S) -> (N, hidden, 3) (matches torch.stack(dim=-1))."""
    n, s, _ = x.shape
    k_in = s * s
    k_pad = M_pad.shape[1]

    x_flat = x.reshape(n, k_in)                       # contiguous reshape: free
    m = M_pad.astype(compute_dtype)                   # tiny resident operator
    bias = bias_pad.astype(jnp.float32)

    # Sublane-legal batch tile: multiple of 8 (f32) / 16 (bf16 out), or the
    # whole batch dim (always legal as a full-extent block).
    sub = 16 if jnp.dtype(out_dtype).itemsize < 4 else 8
    if n <= block_batch:
        bt = n
    else:
        bt = max((block_batch // sub) * sub, sub)
    grid = (pl.cdiv(n, bt),)                          # partial last block is masked

    x_bytes = jnp.dtype(x_flat.dtype).itemsize
    m_bytes = jnp.dtype(compute_dtype).itemsize
    o_bytes = jnp.dtype(out_dtype).itemsize

    # Double-buffered streaming tiles + resident operator/bias + headroom.
    vmem_needed = (2 * bt * (k_in * x_bytes + k_pad * o_bytes)
                   + 2 * (k_in + 1) * k_pad * m_bytes + (1 << 20))
    vmem_limit = min(int(vmem_needed * 3 // 2) + (1 << 20), 48 << 20)

    cost = pl.CostEstimate(
        flops=2 * n * k_in * k_pad,
        transcendentals=0,
        bytes_accessed=(n * k_in * x_bytes + n * k_pad * o_bytes
                        + (k_in + 1) * k_pad * m_bytes))

    out_pad = pl.pallas_call(
        microwav_kernel,
        out_shape=jax.ShapeDtypeStruct((n, k_pad), out_dtype),
        grid=grid,
        in_specs=[
            pl.BlockSpec((bt, k_in), lambda i: (i, 0)),       # streaming x tiles
            pl.BlockSpec((k_in, k_pad), lambda i: (0, 0)),    # resident operator
            pl.BlockSpec((1, k_pad), lambda i: (0, 0)),       # resident bias
        ],
        out_specs=pl.BlockSpec((bt, k_pad), lambda i: (i, 0)),  # lane-dense store
        compiler_params=pltpu.CompilerParams(
            dimension_semantics=("parallel",),
            vmem_limit_bytes=vmem_limit),
        cost_estimate=cost,
    )(x_flat, m, bias)

    # Columns are interleaved (h*3 + c): drop lane padding, contiguous reshape.
    k = 3 * hidden
    out = out_pad if k_pad == k else out_pad[:, :k]
    return out.reshape(n, hidden, 3)


# ----------------------------------------------------------------------------
# Pure-JAX reference (independent, slicing-based Haar) for verification
# ----------------------------------------------------------------------------
def microwav_reference(x, level, w_flat, b):
    # TODO(synk): convention verified against the in-file pywt wavedec2 index
    # math (index `level` -> detail depth max_level - level + 1); re-check once
    # against the PyTorch/pywt source if levels other than the default are used.
    inv_sqrt2 = 1.0 / math.sqrt(2.0)
    max_level = int(math.log2(x.shape[-1]))
    L = max_level - level + 1

    def lo_r(t): return (t[..., 0::2, :] + t[..., 1::2, :]) * inv_sqrt2
    def hi_r(t): return (t[..., 0::2, :] - t[..., 1::2, :]) * inv_sqrt2
    def lo_c(t): return (t[..., :, 0::2] + t[..., :, 1::2]) * inv_sqrt2
    def hi_c(t): return (t[..., :, 0::2] - t[..., :, 1::2]) * inv_sqrt2

    a = x
    for _ in range(L - 1):
        a = lo_c(lo_r(a))
    cH = lo_c(hi_r(a))    # 'da'
    cV = hi_c(lo_r(a))    # 'ad'
    cD = hi_c(hi_r(a))    # 'dd'

    outs = []
    for c, coef in enumerate((cH, cV, cD)):
        flat = coef.reshape(coef.shape[0], -1)          # Flatten(start_dim=1)
        outs.append(flat @ w_flat[c] + b[c])
    return jnp.stack(outs, axis=-1)                     # (N, hidden, 3)


# ----------------------------------------------------------------------------
if __name__ == "__main__":
    # Module-consistent shapes: 16x16 "images", level=3 -> 4x4 details,
    # flattened size 16 (= wav_in_channels**2 with wav_in_channels = 4).
    N, S = 2, 16
    LEVEL = 3
    HIDDEN = 32

    max_level = int(math.log2(S))
    SL = S // (2 ** (max_level - LEVEL + 1))            # wav output spatial size
    IN_FEAT = SL * SL                                   # wav_in_channels ** 2

    key = jax.random.PRNGKey(0)
    kx, kw, kb, kx2 = jax.random.split(key, 4)
    x = jax.random.normal(kx, (N, S, S), dtype=jnp.float32)

    # Three Linear(in=SL^2, out=HIDDEN) heads, weights stored as (in, out).
    w_flat = jax.random.normal(kw, (3, IN_FEAT, HIDDEN), dtype=jnp.float32) * 0.1
    b = jax.random.normal(kb, (3, HIDDEN), dtype=jnp.float32) * 0.1

    ra, rh = haar_operators(S, LEVEL)
    M_pad, bias_pad = build_combined_operator(ra, rh, w_flat, b)

    ref = jax.block_until_ready(microwav_reference(x, LEVEL, w_flat, b))

    # f32 path (tight tolerance).
    out = jax.block_until_ready(
        microwav_forward(x, M_pad, bias_pad, HIDDEN, compute_dtype=jnp.float32))
    assert out.shape == (N, HIDDEN, 3), out.shape
    assert jnp.allclose(out, ref, rtol=1e-4, atol=1e-4), (
        float(jnp.max(jnp.abs(out - ref))))

    # bf16-MXU path (f32 accumulation), loose tolerance for bf16 rounding.
    out_bf16 = jax.block_until_ready(
        microwav_forward(x, M_pad, bias_pad, HIDDEN,
                         compute_dtype=jnp.bfloat16, out_dtype=jnp.bfloat16))
    assert jnp.allclose(out_bf16.astype(jnp.float32), ref, rtol=5e-2, atol=5e-2), (
        float(jnp.max(jnp.abs(out_bf16.astype(jnp.float32) - ref))))

    # Multi-step grid with a partial (masked) last block: n=200, bt=64 -> 4 steps.
    N2 = 200
    x2 = jax.random.normal(kx2, (N2, S, S), dtype=jnp.float32)
    ref2 = jax.block_until_ready(microwav_reference(x2, LEVEL, w_flat, b))
    out2 = jax.block_until_ready(
        microwav_forward(x2, M_pad, bias_pad, HIDDEN, block_batch=64))
    assert out2.shape == (N2, HIDDEN, 3), out2.shape
    assert jnp.allclose(out2, ref2, rtol=1e-4, atol=1e-4), (
        float(jnp.max(jnp.abs(out2 - ref2))))

    print("KERNEL_OK")
</pallas_src>

<mosaic_0001>
module attributes {stable_mosaic.version = 11 : i64} {
  func.func @microwav_kernel(%arg0: i32, %arg1: memref<2x256xf32, #tpu.memory_space<vmem>>, %arg2: memref<256x128xf32, #tpu.memory_space<vmem>>, %arg3: memref<1x128xf32, #tpu.memory_space<vmem>>, %arg4: memref<2x128xf32, #tpu.memory_space<vmem>>) attributes {dimension_semantics = [#tpu.dimension_semantics<parallel>], iteration_bounds = array<i64: 1>, scalar_prefetch = 0 : i64, scratch_operands = 0 : i64, tpu.core_type = #tpu.core_type<tc>, window_params = [{transform_indices = @transform_0, window_bounds = array<i64: 2, 256>}, {pipeline_mode = #tpu.pipeline_mode<synchronous>, transform_indices = @transform_1, window_bounds = array<i64: 256, 128>}, {pipeline_mode = #tpu.pipeline_mode<synchronous>, transform_indices = @transform_2, window_bounds = array<i64: 1, 128>}, {transform_indices = @transform_3, window_bounds = array<i64: 2, 128>}]} {
    %c0 = arith.constant 0 : index
    %c0_0 = arith.constant 0 : index
    %0 = vector.load %arg1[%c0, %c0_0] : memref<2x256xf32, #tpu.memory_space<vmem>>, vector<2x256xf32>
    %c0_1 = arith.constant 0 : index
    %c0_2 = arith.constant 0 : index
    %1 = vector.load %arg2[%c0_1, %c0_2] : memref<256x128xf32, #tpu.memory_space<vmem>>, vector<256x128xf32>
    %cst = arith.constant dense<0.000000e+00> : vector<2x128xf32>
    %2 = tpu.matmul %0, %1, %cst {dimension_numbers = #tpu.dot_dimension_numbers<[1], [0], [0], [1], [0, 0, 1, 1], [], []>} : vector<2x256xf32>, vector<256x128xf32>, vector<2x128xf32> -> vector<2x128xf32>
    %c0_3 = arith.constant 0 : index
    %c0_4 = arith.constant 0 : index
    %3 = vector.load %arg3[%c0_3, %c0_4] : memref<1x128xf32, #tpu.memory_space<vmem>>, vector<1x128xf32>
    %4 = vector.broadcast %3 : vector<1x128xf32> to vector<2x128xf32>
    %5 = arith.addf %2, %4 : vector<2x128xf32>
    %c0_5 = arith.constant 0 : index
    %c0_6 = arith.constant 0 : index
    %6 = vector.load %arg4[%c0_5, %c0_6] : memref<2x128xf32, #tpu.memory_space<vmem>>, vector<2x128xf32>
    tpu.vector_store %arg4[%c0_5, %c0_6], %5 {strides = array<i32>} : memref<2x128xf32, #tpu.memory_space<vmem>>, vector<2x128xf32>,
    return
  }
  func.func @transform_0(%arg0: i32) -> (i32, i32) {
    %c0_i32 = arith.constant 0 : i32
    %c0_i32_0 = arith.constant 0 : i32
    return %arg0, %c0_i32 : i32, i32
  }
  func.func @transform_1(%arg0: i32) -> (i32, i32) {
    %c0_i32 = arith.constant 0 : i32
    %c0_i32_0 = arith.constant 0 : i32
    %c0_i32_1 = arith.constant 0 : i32
    return %c0_i32, %c0_i32_0 : i32, i32
  }
  func.func @transform_2(%arg0: i32) -> (i32, i32) {
    %c0_i32 = arith.constant 0 : i32
    %c0_i32_0 = arith.constant 0 : i32
    %c0_i32_1 = arith.constant 0 : i32
    return %c0_i32, %c0_i32_0 : i32, i32
  }
  func.func @transform_3(%arg0: i32) -> (i32, i32) {
    %c0_i32 = arith.constant 0 : i32
    %c0_i32_0 = arith.constant 0 : i32
    return %arg0, %c0_i32 : i32, i32
  }
}

</mosaic_0001>

<bundles_post_ra>
// kernel: tpu_custom_call.1
= control target key start
LH: loop header
LB: loop body
LE: loop exit
PB: predicated region body
PF: predicated region fallthrough
CT: control target
= control target key end

     0   :  { %8 = vsyncpa [#allocation3], 0  ;;  %s396_s0 = inlined_call_operand.hbm [shape: f32[2,256], index: 0, kind: input, shape index: {}]   ;;  %s397_s1 = inlined_call_operand.hbm [shape: f32[256,128], index: 1, kind: input, shape index: {}]   ;;  %s398_s2 = inlined_call_operand.vmem [shape: f32[1,128], index: 2, kind: input, shape index: {}]   ;;  %s399_s3 = inlined_call_operand.hbm [shape: f32[2,128], index: 3, kind: output, shape index: {}]  }
   0x1   :  { %9 = vsyncpa [#allocation6], 0 }
   0x2   :  { %10 = vsyncpa [#allocation4], 0  ;;  %s325_s12 = smov [#allocation2]   ;;  %s326_s14 = smov [#allocation5]  }
   0x3   :  { %s17_s13 = sshll.u32 %s325_s12, 4  ;;  %s26_s15 = sshll.u32 %s326_s14, 4  ;;  %s18_s13 = int_to_ptr.vmem [resolvable:$true] %s17_s13  ;;  %s350_s15 = int_to_ptr.vmem [resolvable:$true] %s26_s15 }
   0x4   :  { %s253_s18 = scalar_lea.hbm %s396_s0, 64 }
   0x5   :  { %p254_p0 = scmp.ne.s32.totalorder %s396_s0, %s253_s18  ;;  %p257_p1 = scmp.lt.u32.totalorder %s253_s18, %s396_s0 }
   0x7   :  { %p259_p2 = pnand %p257_p1, %p254_p0 }
   0x9   :  { %262 = shalt.err (!%p259_p2)
}
   0xa   :  { %s263_s23 = scalar_lea.vmem %s18_s13, 64  ;;  %p268_p4 = scmp.lt.s32.totalorder %s18_s13, %s18_s13 }
   0xb   :  { %p264_p3 = scmp.ne.s32.totalorder %s18_s13, %s263_s23  ;;  %p269_p5 = scmp.lt.s32.totalorder %s263_s23, %s263_s23 }
   0xd   :  { %p270_p6 = por %p269_p5, %p268_p4 }
   0xf   :  { %p271_p7 = pnand %p270_p6, %p264_p3 }
  0x11   :  { %274 = shalt.err (!%p271_p7)
}
  0x12   :  { %20 = dma.hbm_to_vmem [thread:$0]  %s396_s0, 64, %s18_s13, [#allocation3]  }
  0x13   :  { %s275_s28 = scalar_lea.hbm %s397_s1, 4096 }
  0x14   :  { %p276_p8 = scmp.ne.s32.totalorder %s397_s1, %s275_s28  ;;  %p279_p9 = scmp.lt.u32.totalorder %s275_s28, %s397_s1 }
  0x16   :  { %p281_p10 = pnand %p279_p9, %p276_p8 }
  0x18   :  { %284 = shalt.err (!%p281_p10)
}
  0x19   :  { %s285_s6 = scalar_lea.vmem %s350_s15, 4096  ;;  %p290_p12 = scmp.lt.s32.totalorder %s350_s15, %s350_s15 }
  0x1a   :  { %p286_p11 = scmp.ne.s32.totalorder %s350_s15, %s285_s6  ;;  %p291_p13 = scmp.lt.s32.totalorder %s285_s6, %s285_s6 }
  0x1c   :  { %p292_p0 = por %p291_p13, %p290_p12 }
  0x1e   :  { %p293_p1 = pnand %p292_p0, %p286_p11 }
  0x20   :  { %296 = shalt.err (!%p293_p1)
}
  0x21   :  { %s327_s0 = smov 128   ;;  %s328_s7 = smov 8  }
  0x22   :  { %32 = dma.hbm_to_vmem [thread:$0]  %s397_s1, 4096, %s350_s15, [#allocation6], %s327_s0, %s327_s0, %s328_s7  }
  0x23   :  { %319 = dma.done.wait [#allocation3], 64  }
  0x24   :  { %320 = vsyncadd [#allocation3], 4294967232 }
  0x25   :  { %321 = dma.done.wait [#allocation6], 4096  }
  0x26   :  { %322 = vsyncadd [#allocation6], 4294963200  ;;  %v58_v0 = vld [vmem:[#allocation5 + $0x80] sm:$0xff]  ;;  %v59_v1 = vld [vmem:[#allocation5 + $0x88] sm:$0xff]  ;;  %s329_s11 = smov [#allocation7]  }
  0x27   :  { %v42_v2 = vld [vmem:[#allocation5] sm:$0xff]  ;;  %v216_v3 = vpack.c.bf16 %v59_v1, %v58_v0  ;;  %v43_v4 = vld [vmem:[#allocation5 + $0x8] sm:$0xff]  ;;  %v60_v5 = vld [vmem:[#allocation5 + $0x90] sm:$0xff]  ;;  %s169_s12 = sshll.u32 %s329_s11, 4  ;;  %s170_s12 = int_to_ptr.vmem [resolvable:$true] %s169_s12 }
  0x28   :  { %v61_v6 = vld [vmem:[#allocation5 + $0x98] sm:$0xff]  ;;  %v218_v7 = vpack.c.bf16 %v43_v4, %v42_v2  ;;  %v44_v9 = vld [vmem:[#allocation5 + $0x10] sm:$0xff]  ;;  %v62_v11 = vld [vmem:[#allocation5 + $0xa0] sm:$0xff]  ;;  %s297_s13 = scalar_lea.vmem %s170_s12, 32  ;;  %p302_p3 = scmp.lt.s32.totalorder %s170_s12, %s170_s12 }
  0x29   :  { %v220_v8 = vpack.c.bf16 %v61_v6, %v60_v5  ;;  %v45_v10 = vld [vmem:[#allocation5 + $0x18] sm:$0xff]  ;;  %217 = vmatprep.subr.bf16.mxu0 %v216_v3  ;;  %v63_v12 = vld [vmem:[#allocation5 + $0xa8] sm:$0xff]  ;;  %v46_v15 = vld [vmem:[#allocation5 + $0x20] sm:$0xff]  ;;  %p298_p2 = scmp.ne.s32.totalorder %s170_s12, %s297_s13  ;;  %p303_p4 = scmp.lt.s32.totalorder %s297_s13, %s297_s13 }
  0x2a   :  { %219 = vmatpush3.bf16.msra.mxu0 %v218_v7  ;;  %v222_v13 = vpack.c.bf16 %v45_v10, %v44_v9  ;;  %v224_v14 = vpack.c.bf16 %v63_v12, %v62_v11  ;;  %v47_v16 = vld [vmem:[#allocation5 + $0x28] sm:$0xff]  ;;  %v64_v17 = vld [vmem:[#allocation5 + $0xb0] sm:$0xff]  ;;  %v65_v18 = vld [vmem:[#allocation5 + $0xb8] sm:$0xff] }
  0x2b   :  { %221 = vmatprep.subr.bf16.mxu0 %v220_v8  ;;  %v226_v19 = vpack.c.bf16 %v47_v16, %v46_v15  ;;  %v228_v20 = vpack.c.bf16 %v65_v18, %v64_v17  ;;  %v48_v21 = vld [vmem:[#allocation5 + $0x30] sm:$0xff]  ;;  %v49_v22 = vld [vmem:[#allocation5 + $0x38] sm:$0xff]  ;;  %v66_v23 = vld [vmem:[#allocation5 + $0xc0] sm:$0xff]  ;;  %p304_p5 = por %p303_p4, %p302_p3 }
  0x2c   :  { %v67_v24 = vld [vmem:[#allocation5 + $0xc8] sm:$0xff]  ;;  %v180_v25 = vld.sshfl [vmem:[#allocation2] sm:$0x33 pattern:$0x76325410]  ;;  %v230_v27 = vpack.c.bf16 %v49_v22, %v48_v21  ;;  %v50_v29 = vld [vmem:[#allocation5 + $0x40] sm:$0xff] }
  0x2d   :  { %v89_v26 = vcombine.high %v180_v25, %v180_v25  ;;  %v232_v28 = vpack.c.bf16 %v67_v24, %v66_v23  ;;  %v51_v30 = vld [vmem:[#allocation5 + $0x48] sm:$0xff]  ;;  %v68_v31 = vld [vmem:[#allocation5 + $0xd0] sm:$0xff]  ;;  %v69_v32 = vld [vmem:[#allocation5 + $0xd8] sm:$0xff]  ;;  %p305_p6 = pnand %p304_p5, %p298_p2 }
  0x2e   :  { %223 = vmatpush3.bf16.msra.mxu0 %v222_v13  ;;  %v234_v33 = vpack.c.bf16 %v51_v30, %v50_v29  ;;  %v236_v34 = vpack.c.bf16 %v69_v32, %v68_v31  ;;  %v52_v35 = vld [vmem:[#allocation5 + $0x50] sm:$0xff]  ;;  %v53_v36 = vld [vmem:[#allocation5 + $0x58] sm:$0xff]  ;;  %v70_v37 = vld [vmem:[#allocation5 + $0xe0] sm:$0xff] }
  0x2f   :  { %225 = vmatprep.subr.bf16.mxu0 %v224_v14  ;;  %156 = vmatprep.mubr.f32.mxu0 %v89_v26  ;;  %v71_v38 = vld [vmem:[#allocation5 + $0xe8] sm:$0xff]  ;;  %v238_v39 = vpack.c.bf16 %v53_v36, %v52_v35  ;;  %v54_v41 = vld [vmem:[#allocation5 + $0x60] sm:$0xff]  ;;  %v72_v43 = vld [vmem:[#allocation5 + $0xf0] sm:$0xff] }
  0x30   :  { %v240_v40 = vpack.c.bf16 %v71_v38, %v70_v37  ;;  %v55_v42 = vld [vmem:[#allocation5 + $0x68] sm:$0xff]  ;;  %v73_v44 = vld [vmem:[#allocation5 + $0xf8] sm:$0xff]  ;;  %v56_v47 = vld [vmem:[#allocation5 + $0x70] sm:$0xff] }
  0x31   :  { %v242_v45 = vpack.c.bf16 %v55_v42, %v54_v41  ;;  %v244_v46 = vpack.c.bf16 %v73_v44, %v72_v43  ;;  %v57_v48 = vld [vmem:[#allocation5 + $0x78] sm:$0xff] }
  0x32   :  { %227 = vmatpush3.bf16.msra.mxu0 %v226_v19  ;;  %v246_v49 = vpack.c.bf16 %v57_v48, %v56_v47  ;;  %v179_v51 = vld [vmem:[%s398_s2] ss:$0 sm:$0xff] }
  0x33   :  { %229 = vmatprep.subr.bf16.mxu0 %v228_v20 }
  0x36   :  { %231 = vmatpush3.bf16.msra.mxu0 %v230_v27 }
  0x37   :  { %233 = vmatprep.subr.bf16.mxu0 %v232_v28 }
  0x3a   :  { %235 = vmatpush3.bf16.msra.mxu0 %v234_v33 }
  0x3b   :  { %237 = vmatprep.subr.bf16.mxu0 %v236_v34 }
  0x3e   :  { %239 = vmatpush3.bf16.msra.mxu0 %v238_v39 }
  0x3f   :  { %241 = vmatprep.subr.bf16.mxu0 %v240_v40 }
  0x42   :  { %243 = vmatpush3.bf16.msra.mxu0 %v242_v45 }
  0x43   :  { %245 = vmatprep.subr.bf16.mxu0 %v244_v46 }
  0x46   :  { %247 = vmatpush3.bf16.msra.mxu0 %v246_v49 }
  0x49   :  { %157 = vmatmul.mubr.f32.vlgmr.msra.gmra.mrb[0].mxu0 %v180_v25 }
 0x11c   :  { %v213_v50 = vpop.f32.mrb[0].mxu0 }
 0x11d   :  { %v214_v52 = vpop.f32.mrb[1].mxu0 }
 0x11e   :  { %v215_v53 = vadd.f32 %v214_v52, %v213_v50 }
 0x120   :  { %v159_v54 = vadd.f32 %v215_v53, %v179_v51 }
 0x122   :  { %162 = vst [vmem:[#allocation7] sm:$0x3] %v159_v54 }
 0x123   :  { %308 = shalt.err (!%p305_p6)
}
 0x124   :  { %s309_s16 = scalar_lea.hbm %s399_s3, 32 }
 0x125   :  { %p310_p7 = scmp.ne.s32.totalorder %s399_s3, %s309_s16  ;;  %p313_p8 = scmp.lt.u32.totalorder %s309_s16, %s399_s3 }
 0x127   :  { %p315_p9 = pnand %p313_p8, %p310_p7 }
 0x129   :  { %318 = shalt.err (!%p315_p9)
}
 0x12a   :  { %172 = dma.vmem_to_hbm [thread:$0]  %s170_s12, 32, %s399_s3, [#allocation4]  }
 0x12b   :  { %323 = dma.done.wait [#allocation4], 32  }
 0x12c   :  { %324 = vsyncadd [#allocation4], 4294967264 }
 0x12d   :  { %176 = vsyncpa [#allocation3], 1 }
 0x12e   :  { %177 = vsyncpa [#allocation6], 1 }
 0x12f   :  { %178 = vsyncpa [#allocation4], 1 }

</bundles_post_ra>
